<compile_context>
chip_gen: v7x
topology: tpu7x:2x2x1
jax: 0.10.0
libtpu: 0.0.40
codegen_flags: <defaults>
</compile_context>

<pallas_src>
import functools

import jax
import jax.numpy as jnp
from jax.experimental import pallas as pl
from jax.experimental.pallas import tpu as pltpu

_F32 = jnp.float32
_BUFFERED1_MIN_BYTES = 1 << 20             # single-buffer constants >= 1 MiB
_DEFAULT_VMEM_BUDGET = 20 * 1024 * 1024    # conservative: v7x-safe working set
_DEFAULT_FUSED_MAX_BYTES = 6 * 1024 * 1024  # f32-equivalent z bytes for fused path


def _const_spec(shape, index_map, nbytes):
    """BlockSpec for a grid-invariant operand; single-buffer it when large."""
    if nbytes >= _BUFFERED1_MIN_BYTES:
        return pl.BlockSpec(shape, index_map, pipeline_mode=pl.Buffered(1))
    return pl.BlockSpec(shape, index_map)


def _resident_bytes(nbytes):
    """VMEM residency of a grid-invariant operand (2x unless single-buffered)."""
    return nbytes if nbytes >= _BUFFERED1_MIN_BYTES else 2 * nbytes


def _pick_row_tile(n_rows, row_bytes, budget_bytes, requested=None):
    """Row tile: a multiple of 8 (or the full extent), double-buffered in budget."""
    if requested is None:
        t = max(8, budget_bytes // (2 * row_bytes))
    else:
        t = max(1, int(requested))
    t = min(t, n_rows)
    if t >= n_rows:
        return n_rows
    t = max(8, (t // 8) * 8)
    return min(t, n_rows)


# ---------------------------------------------------------------------------
# Pass 1 (streaming path): per-core partial column sums of g = tanh(zW1+b1)*w2
# ---------------------------------------------------------------------------
def _score_kernel(z_ref, w1_ref, b1_ref, w2_ref, part_ref, *,
                  n_total, tile_n, tiles_per_core, m_count, d, block_diag):
    c = pl.program_id(0)          # megacore shard ("parallel")
    t = pl.program_id(1)          # tile within the shard ("arbitrary")

    @pl.when(t == 0)
    def _init():
        part_ref[...] = jnp.zeros_like(part_ref)

    # Mask rows of ragged / out-of-range tiles so the mean divisor stays n_total
    # (jnp.where is a select: garbage/NaN bits in padded rows cannot propagate).
    row = jax.lax.broadcasted_iota(jnp.int32, (tile_n, 1), 0)
    base = (c * tiles_per_core + t) * tile_n
    valid = (base + row) < n_total

    if block_diag:
        # One fused MXU matmul: (TN, M*D) @ block_diag(w1, ..., w1).
        h = jnp.tanh(jnp.dot(z_ref[...], w1_ref[...],
                             preferred_element_type=jnp.float32) + b1_ref[...])
        g = jnp.where(valid, h * w2_ref[...], 0.0)          # D->1 Linear on the VPU
        part_ref[...] += jnp.sum(g, axis=0, keepdims=True).reshape(part_ref.shape)
    else:
        # Large-M*D / v7x VMEM guard: per-metapath matmuls on the plain (D, D) w1.
        cols = []
        for m in range(m_count):
            zm = z_ref[:, m * d:(m + 1) * d]
            h = jnp.tanh(jnp.dot(zm, w1_ref[...],
                                 preferred_element_type=jnp.float32) + b1_ref[...])
            g = jnp.where(valid, h * w2_ref[...], 0.0)
            cols.append(jnp.sum(g, axis=0, keepdims=True))   # (1, D)
        part_ref[...] += jnp.concatenate(cols, axis=1).reshape(part_ref.shape)


# ---------------------------------------------------------------------------
# Pass 2 (streaming path): out = sum_m beta[m] * z[:, m, :] as one lane-dense matmul
# ---------------------------------------------------------------------------
def _weighted_sum_kernel(z_ref, wb_ref, o_ref):
    o_ref[...] = jnp.dot(z_ref[...], wb_ref[...],
                         preferred_element_type=jnp.float32).astype(o_ref.dtype)


# ---------------------------------------------------------------------------
# Fused single-kernel path: z resident in VMEM -> one HBM read of z total.
# ---------------------------------------------------------------------------
def _fused_kernel(z_ref, w1_ref, b1_ref, w2_ref, gsum_ref, beta_ref, o_ref, *,
                  n_total, m_count, d):
    z = z_ref[...]
    h = jnp.tanh(jnp.dot(z, w1_ref[...], preferred_element_type=jnp.float32)
                 + b1_ref[...])
    g = h * w2_ref[...]                                      # (N, M*D) f32
    col = jnp.sum(g, axis=0, keepdims=True)                  # (1, M*D)
    scores = jnp.dot(col, gsum_ref[...],
                     preferred_element_type=jnp.float32) / n_total     # (1, M)
    s = scores - jnp.max(scores, axis=-1, keepdims=True)
    e = jnp.exp(s)
    beta = e / jnp.sum(e, axis=-1, keepdims=True)            # (1, M) f32
    beta_ref[...] = beta

    acc = jnp.zeros((z.shape[0], d), jnp.float32)
    for m in range(m_count):
        acc = acc + beta[0:1, m:m + 1] * z[:, m * d:(m + 1) * d].astype(jnp.float32)
    o_ref[...] = acc.astype(o_ref.dtype)


# ---------------------------------------------------------------------------
# Wrapper
# ---------------------------------------------------------------------------
def semantic_attention(z, w1, b1, w2, *,
                       compute_dtype=jnp.bfloat16,
                       tile_rows=None,
                       num_score_cores=2,
                       force_two_pass=False,
                       use_block_diag=None,
                       vmem_budget_bytes=_DEFAULT_VMEM_BUDGET,
                       fused_max_bytes=_DEFAULT_FUSED_MAX_BYTES):
    """z: (N, M, D).  w1: (D, D) = torch project[0].weight.T, b1: (D,),
    w2: (D, 1) = torch project[2].weight.T.  Returns (beta (M, 1), out (N, D)).

    compute_dtype is the streamed dtype of z / packed MXU weights (accumulation
    is always f32); jnp.float32 gives exact parity with the f32 reference.
    """
    N, M, D = z.shape
    MD = M * D
    cdt = jnp.dtype(compute_dtype)
    itemsize = cdt.itemsize
    out_dtype = z.dtype

    # Lane-dense 2-D view of z (merge of contiguous minor dims; no transpose).
    # The bf16 cast (when z arrives as f32) is one cheap elementwise XLA pass;
    # callers already holding z in bf16 pay nothing.
    z2 = z.reshape(N, MD).astype(cdt)

    b1_row = b1.reshape(1, D).astype(_F32)
    w2_row = w2.reshape(1, D).astype(_F32)

    # (M*D)^2 block-diagonal w1 only while it fits the VMEM budget (v7x guard).
    blockdiag_bytes = MD * MD * itemsize
    if use_block_diag is None:
        use_block_diag = blockdiag_bytes <= vmem_budget_bytes // 4
    use_block_diag = bool(use_block_diag)

    if use_block_diag:
        w1_mat = jnp.kron(jnp.eye(M, dtype=_F32), w1.astype(_F32)).astype(cdt)  # (MD, MD)
        b1_k = jnp.tile(b1_row, (1, M))                                          # (1, MD)
        w2_k = jnp.tile(w2_row, (1, M))                                          # (1, MD)
    else:
        w1_mat = w1.astype(cdt)                                                  # (D, D)
        b1_k = b1_row
        w2_k = w2_row

    # ---------------- Fused path: z read from HBM exactly once -----------------
    fused_ok = (not force_two_pass) and use_block_diag and (N * MD * 4 <= fused_max_bytes)
    if fused_ok:
        gsum = jnp.kron(jnp.eye(M, dtype=_F32), jnp.ones((D, 1), _F32))          # (MD, M)
        beta_row, out = pl.pallas_call(
            functools.partial(_fused_kernel, n_total=N, m_count=M, d=D),
            out_shape=(jax.ShapeDtypeStruct((1, M), _F32),
                       jax.ShapeDtypeStruct((N, D), out_dtype)),
            grid_spec=pltpu.PrefetchScalarGridSpec(
                num_scalar_prefetch=0,
                grid=(1,),
                in_specs=[
                    pl.BlockSpec((N, MD), lambda i: (0, 0)),
                    pl.BlockSpec((MD, MD), lambda i: (0, 0)),
                    pl.BlockSpec((1, MD), lambda i: (0, 0)),
                    pl.BlockSpec((1, MD), lambda i: (0, 0)),
                    pl.BlockSpec((MD, M), lambda i: (0, 0)),
                ],
                out_specs=[pl.BlockSpec((1, M), lambda i: (0, 0)),
                           pl.BlockSpec((N, D), lambda i: (0, 0))],
            ),
            compiler_params=pltpu.CompilerParams(
                dimension_semantics=("arbitrary",),
                vmem_limit_bytes=32 * 1024 * 1024,
            ),
        )(z2, w1_mat, b1_k, w2_k, gsum)
        return beta_row.reshape(M, 1), out

    # ---------------- Pass 1: per-core partial column sums ---------------------
    w1_bytes = int(w1_mat.size) * itemsize
    small_bytes = (int(b1_k.size) + int(w2_k.size)) * 4
    budget1 = max(512 * 1024,
                  vmem_budget_bytes - _resident_bytes(w1_bytes) - 2 * small_bytes)
    tn = _pick_row_tile(N, MD * itemsize, budget1, tile_rows)
    n_blocks = pl.cdiv(N, tn)
    ncores = max(1, int(num_score_cores))
    tiles_per_core = pl.cdiv(n_blocks, ncores)

    def z_map(c, t):
        # Clamp fully out-of-range blocks (odd block counts); their rows are masked.
        return (jnp.minimum(c * tiles_per_core + t, n_blocks - 1), 0)

    partials = pl.pallas_call(
        functools.partial(_score_kernel, n_total=N, tile_n=tn,
                          tiles_per_core=tiles_per_core, m_count=M, d=D,
                          block_diag=use_block_diag),
        out_shape=jax.ShapeDtypeStruct((ncores, 1, MD), _F32),
        grid_spec=pltpu.PrefetchScalarGridSpec(
            num_scalar_prefetch=0,
            grid=(ncores, tiles_per_core),
            in_specs=[
                pl.BlockSpec((tn, MD), z_map),                         # z tiles (pipelined)
                _const_spec(w1_mat.shape, lambda c, t: (0, 0), w1_bytes),
                pl.BlockSpec(b1_k.shape, lambda c, t: (0, 0)),
                pl.BlockSpec(w2_k.shape, lambda c, t: (0, 0)),
            ],
            out_specs=pl.BlockSpec((1, 1, MD), lambda c, t: (c, 0, 0)),
        ),
        compiler_params=pltpu.CompilerParams(
            dimension_semantics=("parallel", "arbitrary"),   # cores x running sum
            vmem_limit_bytes=32 * 1024 * 1024,
        ),
    )(z2, w1_mat, b1_k, w2_k)

    # Tiny epilogue (f32): mean over nodes, group-sum over D, softmax over M.
    col_sums = jnp.sum(partials, axis=(0, 1))                 # (MD,)
    scores = col_sums.reshape(M, D).sum(axis=1) / N           # (M,)
    beta = jax.nn.softmax(scores.astype(_F32)).reshape(M, 1)  # (M, 1)

    # ---------------- Pass 2: beta-weighted sum over metapaths -----------------
    # Pack r = 128 // D node rows per kernel row (when shapes allow) so both the
    # input tile and the (rows, r*D) output store are full-128-lane dense.
    r = 1
    if D < 128 and 128 % D == 0 and N % (128 // D) == 0:
        r = 128 // D
    rows = N // r
    zb = z2.reshape(rows, r * MD)                              # free reshape

    wbeta = jnp.kron(beta.astype(_F32), jnp.eye(D, dtype=_F32))          # (MD, D)
    if r > 1:
        wbeta = jnp.kron(jnp.eye(r, dtype=_F32), wbeta)                  # (rMD, rD)
    wbeta = wbeta.astype(cdt)
    wb_bytes = int(wbeta.size) * itemsize

    budget2 = max(512 * 1024, vmem_budget_bytes - _resident_bytes(wb_bytes))
    req2 = None if tile_rows is None else max(1, int(tile_rows) // r)
    tb = _pick_row_tile(rows, r * MD * itemsize + r * D * 4, budget2, req2)

    out_packed = pl.pallas_call(
        _weighted_sum_kernel,
        out_shape=jax.ShapeDtypeStruct((rows, r * D), out_dtype),
        grid_spec=pltpu.PrefetchScalarGridSpec(
            num_scalar_prefetch=0,
            grid=(pl.cdiv(rows, tb),),
            in_specs=[
                pl.BlockSpec((tb, r * MD), lambda i: (i, 0)),
                _const_spec(wbeta.shape, lambda i: (0, 0), wb_bytes),
            ],
            out_specs=pl.BlockSpec((tb, r * D), lambda i: (i, 0)),
        ),
        compiler_params=pltpu.CompilerParams(
            dimension_semantics=("parallel",),                 # megacore row-parallel
            vmem_limit_bytes=32 * 1024 * 1024,
        ),
    )(zb, wbeta)

    return beta, out_packed.reshape(N, D)


def reference(z, w1, b1, w2):
    h = jnp.tanh(z @ w1 + b1)               # (N, M, D)
    w = (h @ w2).mean(0)                    # (M, 1)
    beta = jax.nn.softmax(w, axis=0)        # (M, 1)
    out = (beta[None, :, :] * z).sum(1)     # (N, D)
    return beta, out


if __name__ == "__main__":
    def make_inputs(n, m, d, seed):
        key = jax.random.PRNGKey(seed)
        kz, kw1, kb1, kw2 = jax.random.split(key, 4)
        z = jax.random.normal(kz, (n, m, d), dtype=jnp.float32)
        w1 = jax.random.normal(kw1, (d, d), dtype=jnp.float32) * (2.0 / (d + d)) ** 0.5
        b1 = jax.random.normal(kb1, (d,), dtype=jnp.float32) * 0.01
        w2 = jax.random.normal(kw2, (d, 1), dtype=jnp.float32) * (2.0 / (d + 1)) ** 0.5
        return z, w1, b1, w2

    def check(name, fn, n, m, d, seed, atol, rtol):
        z, w1, b1, w2 = make_inputs(n, m, d, seed)
        beta, out = jax.block_until_ready(fn(z, w1, b1, w2))
        beta_r, out_r = reference(z, w1, b1, w2)
        assert beta.shape == (m, 1) and out.shape == (n, d), name
        assert jnp.allclose(beta, beta_r, atol=atol, rtol=rtol), name
        assert jnp.allclose(out, out_r, atol=atol, rtol=rtol), name

    M, D = 4, 32

    # 1) Fused single-kernel path (z resident in VMEM), exact f32 parity.
    check("fused_f32",
          jax.jit(functools.partial(semantic_attention, compute_dtype=jnp.float32)),
          64, M, D, 0, 2e-5, 2e-5)

    # 2) Two-pass streaming path, f32: multi-tile per-core accumulation + ragged tile.
    check("two_pass_f32_ragged",
          jax.jit(functools.partial(semantic_attention, compute_dtype=jnp.float32,
                                    force_two_pass=True, tile_rows=64)),
          200, M, D, 1, 2e-5, 2e-5)

    # 3) Two-pass streaming path, default bf16 streaming (f32 accumulation).
    check("two_pass_bf16",
          jax.jit(functools.partial(semantic_attention, force_two_pass=True,
                                    tile_rows=64)),
          256, M, D, 2, 3e-2, 3e-2)

    # 4) Per-metapath-loop pass-1 variant (large-M*D / v7x VMEM-guard fallback), f32.
    check("two_pass_loop_w1",
          jax.jit(functools.partial(semantic_attention, compute_dtype=jnp.float32,
                                    force_two_pass=True, use_block_diag=False,
                                    tile_rows=64)),
          200, M, D, 3, 2e-5, 2e-5)

    print("KERNEL_OK")
</pallas_src>

<mosaic_0001>
module attributes {stable_mosaic.version = 11 : i64} {
  func.func @_fused_kernel(%arg0: i32, %arg1: memref<64x128xf32, #tpu.memory_space<vmem>>, %arg2: memref<128x128xf32, #tpu.memory_space<vmem>>, %arg3: memref<1x128xf32, #tpu.memory_space<vmem>>, %arg4: memref<1x128xf32, #tpu.memory_space<vmem>>, %arg5: memref<128x4xf32, #tpu.memory_space<vmem>>, %arg6: memref<1x4xf32, #tpu.memory_space<vmem>>, %arg7: memref<64x32xf32, #tpu.memory_space<vmem>>) attributes {dimension_semantics = [#tpu.dimension_semantics<arbitrary>], iteration_bounds = array<i64: 1>, scalar_prefetch = 0 : i64, scratch_operands = 0 : i64, tpu.core_type = #tpu.core_type<tc>, window_params = [{pipeline_mode = #tpu.pipeline_mode<synchronous>, transform_indices = @transform_0, window_bounds = array<i64: 64, 128>}, {pipeline_mode = #tpu.pipeline_mode<synchronous>, transform_indices = @transform_1, window_bounds = array<i64: 128, 128>}, {pipeline_mode = #tpu.pipeline_mode<synchronous>, transform_indices = @transform_2, window_bounds = array<i64: 1, 128>}, {pipeline_mode = #tpu.pipeline_mode<synchronous>, transform_indices = @transform_3, window_bounds = array<i64: 1, 128>}, {pipeline_mode = #tpu.pipeline_mode<synchronous>, transform_indices = @transform_4, window_bounds = array<i64: 128, 4>}, {pipeline_mode = #tpu.pipeline_mode<synchronous>, transform_indices = @transform_5, window_bounds = array<i64: 1, 4>}, {pipeline_mode = #tpu.pipeline_mode<synchronous>, transform_indices = @transform_6, window_bounds = array<i64: 64, 32>}]} {
    %c0 = arith.constant 0 : index
    %c0_0 = arith.constant 0 : index
    %0 = vector.load %arg1[%c0, %c0_0] : memref<64x128xf32, #tpu.memory_space<vmem>>, vector<64x128xf32>
    %c0_1 = arith.constant 0 : index
    %c0_2 = arith.constant 0 : index
    %1 = vector.load %arg2[%c0_1, %c0_2] : memref<128x128xf32, #tpu.memory_space<vmem>>, vector<128x128xf32>
    %cst = arith.constant dense<0.000000e+00> : vector<64x128xf32>
    %2 = tpu.matmul %0, %1, %cst {dimension_numbers = #tpu.dot_dimension_numbers<[1], [0], [0], [1], [0, 0, 1, 1], [], []>} : vector<64x128xf32>, vector<128x128xf32>, vector<64x128xf32> -> vector<64x128xf32>
    %c0_3 = arith.constant 0 : index
    %c0_4 = arith.constant 0 : index
    %3 = vector.load %arg3[%c0_3, %c0_4] : memref<1x128xf32, #tpu.memory_space<vmem>>, vector<1x128xf32>
    %4 = vector.broadcast %3 : vector<1x128xf32> to vector<64x128xf32>
    %5 = arith.addf %2, %4 : vector<64x128xf32>
    %6 = math.tanh %5 : vector<64x128xf32>
    %c0_5 = arith.constant 0 : index
    %c0_6 = arith.constant 0 : index
    %7 = vector.load %arg4[%c0_5, %c0_6] : memref<1x128xf32, #tpu.memory_space<vmem>>, vector<1x128xf32>
    %8 = vector.broadcast %7 : vector<1x128xf32> to vector<64x128xf32>
    %9 = arith.mulf %6, %8 : vector<64x128xf32>
    %cst_7 = arith.constant dense<0.000000e+00> : vector<128xf32>
    %10 = vector.multi_reduction <add>, %9, %cst_7 [0] : vector<64x128xf32> to vector<128xf32>
    %11 = vector.shape_cast %10 : vector<128xf32> to vector<1x128xf32>
    %c0_8 = arith.constant 0 : index
    %c0_9 = arith.constant 0 : index
    %12 = vector.load %arg5[%c0_8, %c0_9] : memref<128x4xf32, #tpu.memory_space<vmem>>, vector<128x4xf32>
    %cst_10 = arith.constant dense<0.000000e+00> : vector<1x4xf32>
    %13 = tpu.matmul %11, %12, %cst_10 {dimension_numbers = #tpu.dot_dimension_numbers<[1], [0], [0], [1], [0, 0, 1, 1], [], []>} : vector<1x128xf32>, vector<128x4xf32>, vector<1x4xf32> -> vector<1x4xf32>
    %cst_11 = arith.constant 6.400000e+01 : f32
    %14 = vector.broadcast %cst_11 : f32 to vector<1x4xf32>
    %15 = arith.divf %13, %14 : vector<1x4xf32>
    %cst_12 = arith.constant dense<0xFF800000> : vector<1xf32>
    %16 = vector.multi_reduction <maximumf>, %15, %cst_12 [1] : vector<1x4xf32> to vector<1xf32>
    %17 = vector.shape_cast %16 : vector<1xf32> to vector<1x1xf32>
    %18 = vector.broadcast %17 : vector<1x1xf32> to vector<1x4xf32>
    %19 = arith.subf %15, %18 : vector<1x4xf32>
    %20 = math.exp %19 : vector<1x4xf32>
    %cst_13 = arith.constant dense<0.000000e+00> : vector<1xf32>
    %21 = vector.multi_reduction <add>, %20, %cst_13 [1] : vector<1x4xf32> to vector<1xf32>
    %22 = vector.shape_cast %21 : vector<1xf32> to vector<1x1xf32>
    %23 = vector.broadcast %22 : vector<1x1xf32> to vector<1x4xf32>
    %24 = arith.divf %20, %23 : vector<1x4xf32>
    %c0_14 = arith.constant 0 : index
    %c0_15 = arith.constant 0 : index
    %25 = vector.load %arg6[%c0_14, %c0_15] : memref<1x4xf32, #tpu.memory_space<vmem>>, vector<1x4xf32>
    tpu.vector_store %arg6[%c0_14, %c0_15], %24 {strides = array<i32>} : memref<1x4xf32, #tpu.memory_space<vmem>>, vector<1x4xf32>,
    %cst_16 = arith.constant 0.000000e+00 : f32
    %26 = vector.broadcast %cst_16 : f32 to vector<64x32xf32>
    %27 = vector.extract_strided_slice %24 {offsets = [0, 0], sizes = [1, 1], strides = [1, 1]} : vector<1x4xf32> to vector<1x1xf32>
    %28 = vector.extract_strided_slice %0 {offsets = [0, 0], sizes = [64, 32], strides = [1, 1]} : vector<64x128xf32> to vector<64x32xf32>
    %29 = vector.broadcast %27 : vector<1x1xf32> to vector<64x32xf32>
    %30 = arith.mulf %29, %28 : vector<64x32xf32>
    %31 = arith.addf %26, %30 : vector<64x32xf32>
    %32 = vector.extract_strided_slice %24 {offsets = [0, 1], sizes = [1, 1], strides = [1, 1]} : vector<1x4xf32> to vector<1x1xf32>
    %33 = vector.extract_strided_slice %0 {offsets = [0, 32], sizes = [64, 32], strides = [1, 1]} : vector<64x128xf32> to vector<64x32xf32>
    %34 = vector.broadcast %32 : vector<1x1xf32> to vector<64x32xf32>
    %35 = arith.mulf %34, %33 : vector<64x32xf32>
    %36 = arith.addf %31, %35 : vector<64x32xf32>
    %37 = vector.extract_strided_slice %24 {offsets = [0, 2], sizes = [1, 1], strides = [1, 1]} : vector<1x4xf32> to vector<1x1xf32>
    %38 = vector.extract_strided_slice %0 {offsets = [0, 64], sizes = [64, 32], strides = [1, 1]} : vector<64x128xf32> to vector<64x32xf32>
    %39 = vector.broadcast %37 : vector<1x1xf32> to vector<64x32xf32>
    %40 = arith.mulf %39, %38 : vector<64x32xf32>
    %41 = arith.addf %36, %40 : vector<64x32xf32>
    %42 = vector.extract_strided_slice %24 {offsets = [0, 3], sizes = [1, 1], strides = [1, 1]} : vector<1x4xf32> to vector<1x1xf32>
    %43 = vector.extract_strided_slice %0 {offsets = [0, 96], sizes = [64, 32], strides = [1, 1]} : vector<64x128xf32> to vector<64x32xf32>
    %44 = vector.broadcast %42 : vector<1x1xf32> to vector<64x32xf32>
    %45 = arith.mulf %44, %43 : vector<64x32xf32>
    %46 = arith.addf %41, %45 : vector<64x32xf32>
    %c0_17 = arith.constant 0 : index
    %c0_18 = arith.constant 0 : index
    %47 = vector.load %arg7[%c0_17, %c0_18] : memref<64x32xf32, #tpu.memory_space<vmem>>, vector<64x32xf32>
    tpu.vector_store %arg7[%c0_17, %c0_18], %46 {strides = array<i32>} : memref<64x32xf32, #tpu.memory_space<vmem>>, vector<64x32xf32>,
    return
  }
  func.func @transform_0(%arg0: i32) -> (i32, i32) {
    %c0_i32 = arith.constant 0 : i32
    %c0_i32_0 = arith.constant 0 : i32
    %c0_i32_1 = arith.constant 0 : i32
    return %c0_i32, %c0_i32_0 : i32, i32
  }
  func.func @transform_1(%arg0: i32) -> (i32, i32) {
    %c0_i32 = arith.constant 0 : i32
    %c0_i32_0 = arith.constant 0 : i32
    %c0_i32_1 = arith.constant 0 : i32
    return %c0_i32, %c0_i32_0 : i32, i32
  }
  func.func @transform_2(%arg0: i32) -> (i32, i32) {
    %c0_i32 = arith.constant 0 : i32
    %c0_i32_0 = arith.constant 0 : i32
    %c0_i32_1 = arith.constant 0 : i32
    return %c0_i32, %c0_i32_0 : i32, i32
  }
  func.func @transform_3(%arg0: i32) -> (i32, i32) {
    %c0_i32 = arith.constant 0 : i32
    %c0_i32_0 = arith.constant 0 : i32
    %c0_i32_1 = arith.constant 0 : i32
    return %c0_i32, %c0_i32_0 : i32, i32
  }
  func.func @transform_4(%arg0: i32) -> (i32, i32) {
    %c0_i32 = arith.constant 0 : i32
    %c0_i32_0 = arith.constant 0 : i32
    %c0_i32_1 = arith.constant 0 : i32
    return %c0_i32, %c0_i32_0 : i32, i32
  }
  func.func @transform_5(%arg0: i32) -> (i32, i32) {
    %c0_i32 = arith.constant 0 : i32
    %c0_i32_0 = arith.constant 0 : i32
    %c0_i32_1 = arith.constant 0 : i32
    return %c0_i32, %c0_i32_0 : i32, i32
  }
  func.func @transform_6(%arg0: i32) -> (i32, i32) {
    %c0_i32 = arith.constant 0 : i32
    %c0_i32_0 = arith.constant 0 : i32
    %c0_i32_1 = arith.constant 0 : i32
    return %c0_i32, %c0_i32_0 : i32, i32
  }
}

</mosaic_0001>

<bundles_post_ra>
// kernel: semantic_attention.1
= control target key start
LH: loop header
LB: loop body
LE: loop exit
PB: predicated region body
PF: predicated region fallthrough
CT: control target
= control target key end

     0   :  { %s1043_s0 = inlined_call_operand.vmem [shape: f32[64,128], index: 0, kind: input, shape index: {}]   ;;  %s1044_s1 = inlined_call_operand.vmem [shape: f32[128,128], index: 1, kind: input, shape index: {}]   ;;  %s1045_s2 = inlined_call_operand.vmem [shape: f32[1,128], index: 2, kind: input, shape index: {}]   ;;  %s1046_s3 = inlined_call_operand.vmem [shape: f32[1,128], index: 3, kind: input, shape index: {}]   ;;  %s1047_s4 = inlined_call_operand.vmem [shape: f32[128,4], index: 4, kind: input, shape index: {}]   ;;  %s1048_s5 = inlined_call_operand.hbm [shape: f32[1,4], index: 5, kind: output, shape index: {0}]   ;;  %s1049_s6 = inlined_call_operand.vmem [shape: f32[64,32], index: 6, kind: output, shape index: {1}]  }
   0x1   :  { %v31_v0 = vld [vmem:[%s1044_s1] sm:$0xff]  ;;  %v32_v1 = vld [vmem:[%s1044_s1 + $0x8] sm:$0xff]  ;;  %v33_v2 = vld [vmem:[%s1044_s1 + $0x10] sm:$0xff] }
   0x2   :  { %v624_v3 = vpack.c.bf16 %v32_v1, %v31_v0  ;;  %v34_v4 = vld [vmem:[%s1044_s1 + $0x18] sm:$0xff]  ;;  %v35_v6 = vld [vmem:[%s1044_s1 + $0x20] sm:$0xff]  ;;  %v36_v7 = vld [vmem:[%s1044_s1 + $0x28] sm:$0xff] }
   0x3   :  { %v628_v5 = vpack.c.bf16 %v34_v4, %v33_v2  ;;  %v632_v8 = vpack.c.bf16 %v36_v7, %v35_v6  ;;  %v808_v9 = vld [vmem:[%s1043_s0] sm:$0xff]  ;;  %v37_v10 = vld [vmem:[%s1044_s1 + $0x30] sm:$0xff]  ;;  %v38_v11 = vld [vmem:[%s1044_s1 + $0x38] sm:$0xff] }
   0x4   :  { %625 = vmatprep.subr.bf16.mxu0 %v624_v3  ;;  %577 = vmatprep.mubr.f32.mxu0 %v808_v9 }
   0x5   :  { %627 = vmatpush3.bf16.msra.mxu0 %v624_v3 }
   0x6   :  { %629 = vmatprep.subr.bf16.mxu0 %v628_v5 }
   0x9   :  { %631 = vmatpush3.bf16.msra.mxu0 %v628_v5 }
   0xa   :  { %12 = vsyncpa [#allocation3], 0  ;;  %633 = vmatprep.subr.bf16.mxu0 %v632_v8  ;;  %v636_v12 = vpack.c.bf16 %v38_v11, %v37_v10  ;;  %v39_v13 = vld [vmem:[%s1044_s1 + $0x40] sm:$0xff]  ;;  %v40_v14 = vld [vmem:[%s1044_s1 + $0x48] sm:$0xff]  ;;  %v742_v35 = vmov 0.0|0.0   ;;  %vm743_vm0 = vmmov 0  }
   0xb   :  { %v640_v15 = vpack.c.bf16 %v40_v14, %v39_v13  ;;  %v41_v16 = vld [vmem:[%s1044_s1 + $0x50] sm:$0xff]  ;;  %v42_v17 = vld [vmem:[%s1044_s1 + $0x58] sm:$0xff]  ;;  %v43_v19 = vld [vmem:[%s1044_s1 + $0x60] sm:$0xff]  ;;  %656 = vmatprep.subr.bf16.mxu1 %v742_v35  ;;  %v744_v50 = vmov 0.0   ;;  %vm283_vm1 = vcmask 24576   ;;  %s747_s28 = smov 126  }
   0xc   :  { %v644_v18 = vpack.c.bf16 %v42_v17, %v41_v16  ;;  %v44_v20 = vld [vmem:[%s1044_s1 + $0x68] sm:$0xff]  ;;  %v45_v22 = vld [vmem:[%s1044_s1 + $0x70] sm:$0xff]  ;;  %v46_v23 = vld [vmem:[%s1044_s1 + $0x78] sm:$0xff]  ;;  %621 = vmatprep.mubr.msk.f32.mxu1 %vm743_vm0, %v744_v50  ;;  %s748_s8 = smov 96   ;;  %s749_s9 = smov 64  }
   0xd   :  { %635 = vmatpush3.bf16.msra.mxu0 %v632_v8  ;;  %v648_v21 = vpack.c.bf16 %v44_v20, %v43_v19  ;;  %v652_v24 = vpack.c.bf16 %v46_v23, %v45_v22  ;;  %v844_v25 = vld [vmem:[%s1043_s0 + $0x8] sm:$0xff]  ;;  %v849_v26 = vld [vmem:[%s1043_s0 + $0x10] sm:$0xff]  ;;  %v856_v27 = vld [vmem:[%s1043_s0 + $0x18] sm:$0xff]  ;;  %s750_s1 = smov 32   ;;  %s751_s11 = smov [#allocation2]  }
   0xe   :  { %637 = vmatprep.subr.bf16.mxu0 %v636_v12  ;;  %v861_v28 = vld [vmem:[%s1043_s0 + $0x20] sm:$0xff]  ;;  %v868_v29 = vld [vmem:[%s1043_s0 + $0x28] sm:$0xff]  ;;  %v873_v30 = vld [vmem:[%s1043_s0 + $0x30] sm:$0xff]  ;;  %s490_s12 = sshll.u32 %s751_s11, 4  ;;  %s491_s12 = int_to_ptr.vmem [resolvable:$true] %s490_s12 }
   0xf   :  { %v880_v31 = vld [vmem:[%s1043_s0 + $0x38] sm:$0xff]  ;;  %v195_v32 = vld [vmem:[%s1047_s4] sm:$0xff]  ;;  %v196_v33 = vld [vmem:[%s1047_s4 + $0x8] sm:$0xff]  ;;  %s718_s13 = scalar_lea.vmem %s491_s12, 16  ;;  %s722_s14 = scalar_lea.vmem %s491_s12, 32 }
  0x10   :  { %v657_v34 = vpack.c.bf16 %v196_v33, %v195_v32  ;;  %v197_v36 = vld [vmem:[%s1047_s4 + $0x10] sm:$0xff]  ;;  %v198_v37 = vld [vmem:[%s1047_s4 + $0x18] sm:$0xff]  ;;  %v199_v39 = vld [vmem:[%s1047_s4 + $0x20] sm:$0xff]  ;;  %p719_p0 = scmp.ne.s32.totalorder %s491_s12, %s718_s13  ;;  %p723_p1 = scmp.lt.s32.totalorder %s491_s12, %s491_s12 }
  0x11   :  { %639 = vmatpush3.bf16.msra.mxu0 %v636_v12  ;;  %v660_v38 = vpack.c.bf16 %v198_v37, %v197_v36  ;;  %v200_v40 = vld [vmem:[%s1047_s4 + $0x28] sm:$0xff]  ;;  %v201_v42 = vld [vmem:[%s1047_s4 + $0x30] sm:$0xff]  ;;  %v202_v43 = vld [vmem:[%s1047_s4 + $0x38] sm:$0xff]  ;;  %p724_p2 = scmp.lt.s32.totalorder %s722_s14, %s718_s13 }
  0x12   :  { %641 = vmatprep.subr.bf16.mxu0 %v640_v15  ;;  %658 = vmatpush3.bf16.msra.mxu1 %v657_v34  ;;  %v663_v41 = vpack.c.bf16 %v200_v40, %v199_v39  ;;  %v666_v44 = vpack.c.bf16 %v202_v43, %v201_v42  ;;  %v203_v45 = vld [vmem:[%s1047_s4 + $0x40] sm:$0xff]  ;;  %v204_v46 = vld [vmem:[%s1047_s4 + $0x48] sm:$0xff]  ;;  %v205_v47 = vld [vmem:[%s1047_s4 + $0x50] sm:$0xff] }
  0x13   :  { %659 = vmatprep.subr.bf16.mxu1 %v742_v35  ;;  %v669_v48 = vpack.c.bf16 %v204_v46, %v203_v45  ;;  %v206_v49 = vld [vmem:[%s1047_s4 + $0x58] sm:$0xff]  ;;  %v207_v52 = vld [vmem:[%s1047_s4 + $0x60] sm:$0xff]  ;;  %v208_v53 = vld [vmem:[%s1047_s4 + $0x68] sm:$0xff]  ;;  %p725_p3 = por %p724_p2, %p723_p1 }
  0x14   :  { %v672_v51 = vpack.c.bf16 %v206_v49, %v205_v47  ;;  %v675_v54 = vpack.c.bf16 %v208_v53, %v207_v52  ;;  %v209_v55 = vld [vmem:[%s1047_s4 + $0x70] sm:$0xff]  ;;  %v210_v56 = vld [vmem:[%s1047_s4 + $0x78] sm:$0xff]  ;;  %v502_v58 = vld [vmem:[%s1045_s2] ss:$0 sm:$0xff]  ;;  %s745_s2 = smov 125  }
  0x15   :  { %643 = vmatpush3.bf16.msra.mxu0 %v640_v15  ;;  %v678_v57 = vpack.c.bf16 %v210_v56, %v209_v55  ;;  %v503_v7 = vld [vmem:[%s1046_s3] ss:$0 sm:$0xff]  ;;  %s746_s3 = smov 127   ;;  %p726_p4 = pnand %p725_p3, %p719_p0 }
  0x16   :  { %645 = vmatprep.subr.bf16.mxu0 %v644_v18  ;;  %661 = vmatpush3.bf16.msra.mxu1 %v660_v38 }
  0x17   :  { %662 = vmatprep.subr.bf16.mxu1 %v742_v35 }
  0x19   :  { %647 = vmatpush3.bf16.msra.mxu0 %v644_v18 }
  0x1a   :  { %649 = vmatprep.subr.bf16.mxu0 %v648_v21  ;;  %664 = vmatpush3.bf16.msra.mxu1 %v663_v41 }
  0x1b   :  { %665 = vmatprep.subr.bf16.mxu1 %v742_v35 }
  0x1d   :  { %651 = vmatpush3.bf16.msra.mxu0 %v648_v21 }
  0x1e   :  { %653 = vmatprep.subr.bf16.mxu0 %v652_v24  ;;  %667 = vmatpush3.bf16.msra.mxu1 %v666_v44 }
  0x1f   :  { %668 = vmatprep.subr.bf16.mxu1 %v742_v35 }
  0x21   :  { %655 = vmatpush3.bf16.msra.mxu0 %v652_v24 }
  0x22   :  { %670 = vmatpush3.bf16.msra.mxu1 %v669_v48 }
  0x23   :  { %671 = vmatprep.subr.bf16.mxu1 %v742_v35 }
  0x24   :  { %578 = vmatmul.mubr.f32.vlgmr.msra.gmra.mrb[0].mxu0 %v844_v25 }
  0x25   :  { %580 = vmatprep.mubr.f32.mxu0 %v849_v26 }
  0x26   :  { %673 = vmatpush3.bf16.msra.mxu1 %v672_v51 }
  0x27   :  { %674 = vmatprep.subr.bf16.mxu1 %v742_v35 }
  0x28   :  { %581 = vmatmul.mubr.f32.gmra.mrb[2].mxu0 %v856_v27 }
  0x29   :  { %583 = vmatprep.mubr.f32.mxu0 %v861_v28 }
  0x2a   :  { %676 = vmatpush3.bf16.msra.mxu1 %v675_v54 }
  0x2b   :  { %677 = vmatprep.subr.bf16.mxu1 %v742_v35 }
  0x2c   :  { %584 = vmatmul.mubr.f32.gmra.mrb[4].mxu0 %v868_v29 }
  0x2d   :  { %586 = vmatprep.mubr.f32.mxu0 %v873_v30 }
  0x2e   :  { %679 = vmatpush3.bf16.msra.mxu1 %v678_v57 }
  0x30   :  { %587 = vmatmul.mubr.f32.gmra.mrb[6].mxu0 %v880_v31 }
  0xf7   :  { %v579_v59 = vpop.f32.mrb[0].mxu0 }
  0xf8   :  { %v126_v60 = vadd.f32 %v579_v59, %v502_v58  ;;  %v120_v61 = vpop.f32.mrb[1].mxu0 }
  0xf9   :  { %v121_v62 = vadd.f32 %v502_v58, %v120_v61 }
  0xfa   :  { %698 = vtanh.f32 %v126_v60 }
  0xfb   :  { %700 = vtanh.f32 %v121_v62  ;;  %v582_v63 = vpop.f32.mrb[2].mxu0 }
  0xfc   :  { %v136_v0 = vadd.f32 %v582_v63, %v502_v58  ;;  %v130_v1 = vpop.f32.mrb[3].mxu0 }
  0xfd   :  { %v131_v2 = vadd.f32 %v502_v58, %v130_v1 }
  0xfe   :  { %702 = vtanh.f32 %v136_v0 }
  0xff   :  { %704 = vtanh.f32 %v131_v2  ;;  %v585_v3 = vpop.f32.mrb[4].mxu0 }
 0x100   :  { %v146_v4 = vadd.f32 %v585_v3, %v502_v58  ;;  %v140_v5 = vpop.f32.mrb[5].mxu0 }
 0x101   :  { %v141_v6 = vadd.f32 %v502_v58, %v140_v5 }
 0x102   :  { %706 = vtanh.f32 %v146_v4 }
 0x103   :  { %708 = vtanh.f32 %v141_v6  ;;  %v588_v8 = vpop.f32.mrb[6].mxu0 }
 0x104   :  { %v699_v10 = vpop.eup %698  ;;  %v156_v11 = vadd.f32 %v588_v8, %v502_v58  ;;  %v150_v12 = vpop.f32.mrb[7].mxu0 }
 0x105   :  { %v701_v13 = vpop.eup %700  ;;  %v175_v14 = vmul.f32 %v699_v10, %v503_v7  ;;  %v151_v15 = vadd.f32 %v502_v58, %v150_v12 }
 0x106   :  { %v174_v16 = vmul.f32 %v701_v13, %v503_v7  ;;  %710 = vtanh.f32 %v156_v11 }
 0x107   :  { %712 = vtanh.f32 %v151_v15 }
 0x108   :  { %v703_v17 = vpop.eup %702  ;;  %v182_v18 = vadd.f32 %v175_v14, %v174_v16 }
 0x109   :  { %v705_v19 = vpop.eup %704  ;;  %v177_v22 = vmul.f32 %v703_v17, %v503_v7 }
 0x10a   :  { %v176_v20 = vmul.f32 %v705_v19, %v503_v7 }
 0x10c   :  { %v707_v21 = vpop.eup %706  ;;  %v183_v23 = vadd.f32 %v182_v18, %v176_v20 }
 0x10d   :  { %v709_v24 = vpop.eup %708  ;;  %v179_v35 = vmul.f32 %v707_v21, %v503_v7 }
 0x10e   :  { %v178_v32 = vmul.f32 %v709_v24, %v503_v7  ;;  %v184_v33 = vadd.f32 %v183_v23, %v177_v22 }
 0x110   :  { %v711_v34 = vpop.eup %710  ;;  %v185_v36 = vadd.f32 %v184_v33, %v178_v32 }
 0x111   :  { %v713_v37 = vpop.eup %712  ;;  %v181_v40 = vmul.f32 %v711_v34, %v503_v7 }
 0x112   :  { %v180_v38 = vmul.f32 %v713_v37, %v503_v7  ;;  %v186_v39 = vadd.f32 %v185_v36, %v179_v35 }
 0x114   :  { %v187_v41 = vadd.f32 %v186_v39, %v180_v38 }
 0x116   :  { %v188_v42 = vadd.f32 %v187_v41, %v181_v40 }
 0x118   :  { %v189_v43 = vrot.slane %v188_v42, 4 }
 0x11a   :  { %v190_v44 = vadd.f32 %v189_v43, %v188_v42 }
 0x11c   :  { %v191_v45 = vrot.slane %v190_v44, 2 }
 0x11e   :  { %v192_v46 = vadd.f32 %v191_v45, %v190_v44 }
 0x120   :  { %v193_v47 = vrot.slane %v192_v46, 1 }
 0x122   :  { %v194_v48 = vadd.f32 %v193_v47, %v192_v46 }
 0x124   :  { %622 = vmatmul.mubr.f32.vlgmr.msra.gmra.mrb[0].mxu1 %v194_v48 }
 0x1f7   :  { %v277_v49 = vpop.f32.mrb[0].mxu1 }
 0x1f8   :  { %v282_v50 = vmul.f32 0.015625, %v277_v49  ;;  %v623_v51 = vpop.f32.mrb[1].mxu1 }
 0x1fa   :  { %v284_v52 = vsel %vm283_vm1, %v282_v50, -inf }
 0x1fb   :  { %285 = vmax.xlane.f32.xlu0 %v284_v52 }
 0x288   :  { %v286_v53 = vpop.xlane.xlu0 %285 }
 0x289   :  { %v287_v54 = vsub.f32 %v282_v50, %v286_v53 }
 0x28b   :  { %v288_v55 = vmul.f32 1.442695, %v287_v54 }
 0x28d   :  { %714 = vpow2.f32 %v288_v55 }
 0x297   :  { %v715_v56 = vpop.eup %714 }
 0x298   :  { %v290_v57 = vsel %vm283_vm1, %v715_v56, 0.0 }
 0x299   :  { %291 = vadd.xlane.f32.xlu0 %v290_v57 }
 0x326   :  { %v292_v58 = vpop.xlane.xlu0 %291 }
 0x327   :  { %716 = vrcp.f32 %v292_v58 }
 0x331   :  { %v717_v59 = vpop.eup %716 }
 0x332   :  { %v294_v60 = vmul.f32 %v717_v59, %v715_v56 }
 0x334   :  { %295 = vst.msk [vmem:[#allocation2] sm:$0x1] %vm283_vm1, %v294_v60  ;;  %422 = vrot.lane.b32.xlu0 %v294_v60, %s745_s2  ;;  %316 = vrot.lane.b32.xlu1 %v294_v60, %s746_s3 }
 0x335   :  { %680 = vpush %v294_v60 }
 0x338   :  { %369 = vrot.lane.b32.xlu1 %v294_v60, %s747_s28 }
 0x366   :  { %s940_s29 = spop %680 }
 0x3a6   :  { %v317_v61 = vpop.permute.xlu1 %316  ;;  %v423_v63 = vpop.permute.xlu0 %422 }
 0x3a7   :  { %682 = vpush %v317_v61 }
 0x3aa   :  { %v370_v62 = vpop.permute.xlu1 %369 }
 0x3ab   :  { %684 = vpush %v370_v62 }
 0x3ac   :  { %686 = vpush %v423_v63 }
 0x3d8   :  { %s683_s30 = spop %682 }
 0x3d9   :  { %v319_v0 = vstv %s683_s30 }
 0x3da   :  { %v327_v1 = vmul.f32 %v319_v0, %v873_v30  ;;  %v321_v2 = vmul.f32 %v319_v0, %v808_v9  ;;  %v322_v5 = vmul.f32 %v319_v0, %v844_v25  ;;  %v323_v7 = vmul.f32 %v319_v0, %v849_v26 }
 0x3db   :  { %v324_v10 = vmul.f32 %v319_v0, %v856_v27  ;;  %v325_v12 = vmul.f32 %v319_v0, %v861_v28  ;;  %v326_v15 = vmul.f32 %v319_v0, %v868_v29  ;;  %v328_v17 = vmul.f32 %v319_v0, %v880_v31 }
 0x3dc   :  { %s685_s7 = spop %684  ;;  %349 = vrot.lane.b32.xlu0 %v327_v1, %s748_s8  ;;  %337 = vrot.lane.b32.xlu1 %v321_v2, %s748_s8 }
 0x3dd   :  { %v372_v3 = vstv %s685_s7  ;;  %s687_s10 = spop %686 }
 0x3de   :  { %v374_v4 = vmul.f32 %v372_v3, %v808_v9  ;;  %v376_v6 = vmul.f32 %v372_v3, %v849_v26  ;;  %v378_v8 = vmul.f32 %v372_v3, %v861_v28  ;;  %v380_v11 = vmul.f32 %v372_v3, %v873_v30 }
 0x3df   :  { %v425_v13 = vstv %s687_s10  ;;  %v375_v19 = vmul.f32 %v372_v3, %v844_v25  ;;  %v377_v21 = vmul.f32 %v372_v3, %v856_v27  ;;  %v379_v22 = vmul.f32 %v372_v3, %v868_v29 }
 0x3e0   :  { %390 = vrot.lane.b32.xlu0 %v374_v4, %s749_s9  ;;  %339 = vrot.lane.b32.xlu1 %v322_v5, %s748_s8  ;;  %v427_v14 = vmul.f32 %v425_v13, %v808_v9  ;;  %v429_v16 = vmul.f32 %v425_v13, %v849_v26  ;;  %v431_v18 = vmul.f32 %v425_v13, %v861_v28 }
 0x3e1   :  { %v433_v20 = vmul.f32 %v425_v13, %v873_v30  ;;  %v381_v23 = vmul.f32 %v372_v3, %v880_v31  ;;  %v428_v24 = vmul.f32 %v425_v13, %v844_v25  ;;  %v430_v32 = vmul.f32 %v425_v13, %v856_v27 }
 0x3e4   :  { %394 = vrot.lane.b32.xlu0 %v376_v6, %s749_s9  ;;  %341 = vrot.lane.b32.xlu1 %v323_v7, %s748_s8 }
 0x3e8   :  { %398 = vrot.lane.b32.xlu0 %v378_v8, %s749_s9  ;;  %343 = vrot.lane.b32.xlu1 %v324_v10, %s748_s8 }
 0x3ec   :  { %402 = vrot.lane.b32.xlu0 %v380_v11, %s749_s9  ;;  %345 = vrot.lane.b32.xlu1 %v325_v12, %s748_s8 }
 0x3f0   :  { %443 = vrot.lane.b32.xlu0 %v427_v14, %s750_s1  ;;  %347 = vrot.lane.b32.xlu1 %v326_v15, %s748_s8 }
 0x3f4   :  { %447 = vrot.lane.b32.xlu0 %v429_v16, %s750_s1  ;;  %351 = vrot.lane.b32.xlu1 %v328_v17, %s748_s8 }
 0x3f8   :  { %451 = vrot.lane.b32.xlu0 %v431_v18, %s750_s1  ;;  %392 = vrot.lane.b32.xlu1 %v375_v19, %s749_s9 }
 0x3fc   :  { %455 = vrot.lane.b32.xlu0 %v433_v20, %s750_s1  ;;  %396 = vrot.lane.b32.xlu1 %v377_v21, %s749_s9 }
 0x400   :  { %400 = vrot.lane.b32.xlu1 %v379_v22, %s749_s9 }
 0x404   :  { %404 = vrot.lane.b32.xlu1 %v381_v23, %s749_s9 }
 0x408   :  { %445 = vrot.lane.b32.xlu1 %v428_v24, %s750_s1 }
 0x40c   :  { %449 = vrot.lane.b32.xlu1 %v430_v32, %s750_s1 }
 0x40d   :  { %729 = shalt.err (!%p726_p4)
}
 0x40e   :  { %s730_s17 = scalar_lea.hbm %s1048_s5, 16 }
 0x40f   :  { %p731_p5 = scmp.ne.s32.totalorder %s1048_s5, %s730_s17  ;;  %p734_p6 = scmp.lt.u32.totalorder %s730_s17, %s1048_s5 }
 0x411   :  { %p736_p7 = pnand %p734_p6, %p731_p5 }
 0x413   :  { %739 = shalt.err (!%p736_p7)
}
 0x414   :  { %493 = dma.vmem_to_hbm [thread:$0]  %s491_s12, 16, %s1048_s5, [#allocation3]   ;;  %v432_v33 = vmul.f32 %v425_v13, %v868_v29  ;;  %v434_v34 = vmul.f32 %v425_v13, %v880_v31  ;;  %v298_v41 = vstv %s940_s29  ;;  %vm475_vm2 = vcmask 261120  }
 0x415   :  { %v300_v44 = vmul.f32 %v298_v41, %v808_v9  ;;  %v302_v48 = vmul.f32 %v298_v41, %v849_v26  ;;  %v304_v53 = vmul.f32 %v298_v41, %v861_v28  ;;  %v306_v26 = vmul.f32 %v298_v41, %v873_v30 }
 0x416   :  { %453 = vrot.lane.b32.xlu1 %v432_v33, %s750_s1  ;;  %v301_v3 = vmul.f32 %v298_v41, %v844_v25  ;;  %v303_v6 = vmul.f32 %v298_v41, %v856_v27  ;;  %v305_v12 = vmul.f32 %v298_v41, %v868_v29  ;;  %v307_v25 = vmul.f32 %v298_v41, %v880_v31 }
 0x41a   :  { %457 = vrot.lane.b32.xlu1 %v434_v34, %s750_s1 }
 0x44e   :  { %v350_v35 = vpop.permute.xlu0 %349  ;;  %v338_v36 = vpop.permute.xlu1 %337 }
 0x44f   :  { %v361_v47 = vadd.f32 %v338_v36, %v300_v44  ;;  %v367_v61 = vadd.f32 %v350_v35, %v306_v26 }
 0x452   :  { %v391_v37 = vpop.permute.xlu0 %390  ;;  %v340_v38 = vpop.permute.xlu1 %339 }
 0x453   :  { %v414_v49 = vadd.f32 %v391_v37, %v361_v47  ;;  %v362_v5 = vadd.f32 %v340_v38, %v301_v3 }
 0x456   :  { %v395_v39 = vpop.permute.xlu0 %394  ;;  %v342_v40 = vpop.permute.xlu1 %341 }
 0x457   :  { %v363_v50 = vadd.f32 %v342_v40, %v302_v48 }
 0x459   :  { %v416_v9 = vadd.f32 %v395_v39, %v363_v50 }
 0x45a   :  { %v399_v42 = vpop.permute.xlu0 %398  ;;  %v344_v43 = vpop.permute.xlu1 %343 }
 0x45b   :  { %v364_v10 = vadd.f32 %v344_v43, %v303_v6 }
 0x45e   :  { %v403_v45 = vpop.permute.xlu0 %402  ;;  %v346_v46 = vpop.permute.xlu1 %345 }
 0x45f   :  { %v365_v55 = vadd.f32 %v346_v46, %v304_v53  ;;  %v420_v63 = vadd.f32 %v403_v45, %v367_v61 }
 0x461   :  { %v418_v59 = vadd.f32 %v399_v42, %v365_v55 }
 0x462   :  { %v444_v51 = vpop.permute.xlu0 %443  ;;  %v348_v52 = vpop.permute.xlu1 %347 }
 0x463   :  { %v467_v54 = vadd.f32 %v444_v51, %v414_v49  ;;  %v366_v15 = vadd.f32 %v348_v52, %v305_v12 }
 0x465   :  { %476 = vst.msk [vmem:[%s1049_s6] sm:$0xff] %vm475_vm2, %v467_v54 }
 0x466   :  { %v448_v56 = vpop.permute.xlu0 %447  ;;  %v352_v57 = vpop.permute.xlu1 %351 }
 0x467   :  { %v469_v58 = vadd.f32 %v448_v56, %v416_v9  ;;  %v368_v18 = vadd.f32 %v352_v57, %v307_v25 }
 0x469   :  { %478 = vst.msk [vmem:[%s1049_s6 + $0x10] sm:$0xff] %vm475_vm2, %v469_v58 }
 0x46a   :  { %v452_v28 = vpop.permute.xlu0 %451  ;;  %v393_v60 = vpop.permute.xlu1 %392 }
 0x46b   :  { %v471_v62 = vadd.f32 %v452_v28, %v418_v59  ;;  %v415_v7 = vadd.f32 %v393_v60, %v362_v5 }
 0x46d   :  { %480 = vst.msk [vmem:[%s1049_s6 + $0x20] sm:$0xff] %vm475_vm2, %v471_v62 }
 0x46e   :  { %v456_v0 = vpop.permute.xlu0 %455  ;;  %v397_v1 = vpop.permute.xlu1 %396 }
 0x46f   :  { %v473_v2 = vadd.f32 %v456_v0, %v420_v63  ;;  %v417_v13 = vadd.f32 %v397_v1, %v364_v10 }
 0x471   :  { %482 = vst.msk [vmem:[%s1049_s6 + $0x30] sm:$0xff] %vm475_vm2, %v473_v2 }
 0x472   :  { %v401_v30 = vpop.permute.xlu1 %400 }
 0x473   :  { %v419_v17 = vadd.f32 %v401_v30, %v366_v15 }
 0x476   :  { %v405_v4 = vpop.permute.xlu1 %404 }
 0x477   :  { %v421_v19 = vadd.f32 %v405_v4, %v368_v18 }
 0x47a   :  { %v446_v8 = vpop.permute.xlu1 %445 }
 0x47b   :  { %v468_v11 = vadd.f32 %v446_v8, %v415_v7 }
 0x47d   :  { %477 = vst.msk [vmem:[%s1049_s6 + $0x8] sm:$0xff] %vm475_vm2, %v468_v11 }
 0x47e   :  { %v450_v14 = vpop.permute.xlu1 %449 }
 0x47f   :  { %v470_v16 = vadd.f32 %v450_v14, %v417_v13 }
 0x481   :  { %479 = vst.msk [vmem:[%s1049_s6 + $0x18] sm:$0xff] %vm475_vm2, %v470_v16 }
 0x488   :  { %v454_v27 = vpop.permute.xlu1 %453 }
 0x489   :  { %v472_v29 = vadd.f32 %v454_v27, %v419_v17 }
 0x48b   :  { %481 = vst.msk [vmem:[%s1049_s6 + $0x28] sm:$0xff] %vm475_vm2, %v472_v29 }
 0x48c   :  { %v458_v20 = vpop.permute.xlu1 %457 }
 0x48d   :  { %v474_v21 = vadd.f32 %v458_v20, %v421_v19 }
 0x48f   :  { %483 = vst.msk [vmem:[%s1049_s6 + $0x38] sm:$0xff] %vm475_vm2, %v474_v21 }
 0x490   :  { %740 = dma.done.wait [#allocation3], 16  }
 0x491   :  { %741 = vsyncadd [#allocation3], 4294967280 }
 0x492   :  { %501 = vsyncpa [#allocation3], 1 }

</bundles_post_ra>
